<compile_context>
chip_gen: v7x
topology: tpu7x:2x2x1
jax: 0.10.0
libtpu: 0.0.40
codegen_flags: <defaults>
</compile_context>

<pallas_src>
import jax
import jax.numpy as jnp
from jax.experimental import pallas as pl
from jax.experimental.pallas import tpu as pltpu

NUM_OPTIONS = 4       # config.num_options
HIDDEN = 100          # compute_c hidden width (fixed by the module)
H_PAD = 128           # HIDDEN zero-padded to a full lane tile
W1_ROWS = 16          # (2K+1) input features + 1 bias lane, padded to sublane tile
MAX_BATCH_TILE = 512  # batch tile bound for large B (sized for v7x's 64 MiB VMEM)


def _round_up(x, m):
    return (x + m - 1) // m * m


def _softmax_and_logp(x):
    """softmax(x) and log-softmax(x) along the last dim, sharing intermediates."""
    xm = x - jnp.max(x, axis=-1, keepdims=True)
    e = jnp.exp(xm)
    s = jnp.sum(e, axis=-1, keepdims=True)
    return e / s, xm - jnp.log(s)


def mv_kernel(logits_ref, w1b_ref, w2_ref, b2_ref, out_ref):
    K = NUM_OPTIONS

    p_zk, lp_zk = _softmax_and_logp(logits_ref[0])   # (TB, K)
    p_zb, lp_zb = _softmax_and_logp(logits_ref[1])   # (TB, K)

    # Jensen-Shannon divergence per row, from the log-softmax intermediates.
    m = 0.5 * (p_zk + p_zb)
    logm = jnp.log(m)
    js = 0.5 * (jnp.sum(p_zk * (lp_zk - logm), axis=-1, keepdims=True)
                + jnp.sum(p_zb * (lp_zb - logm), axis=-1, keepdims=True))    # (TB, 1)

    # compute_c layer 1:  x = [p_zk, p_zb, js, 1, 0...]  (TB, 16)
    # w1b rows 0:2K+1 = W1^T (lane-padded to 128), row 2K+1 = b1, rest zeros,
    # so one MXU matmul does x@W1^T + b1 with no unaligned W1 slicing.
    tb = p_zk.shape[0]
    xin = jnp.concatenate(
        [p_zk, p_zb, js,
         jnp.ones((tb, 1), jnp.float32),
         jnp.zeros((tb, W1_ROWS - (2 * K + 2)), jnp.float32)], axis=-1)      # (TB, 16)
    h = jnp.tanh(jnp.dot(xin, w1b_ref[...],
                         preferred_element_type=jnp.float32))                # (TB, 128)

    # compute_c layer 2 (100 -> 1): VPU multiply + lane reduction instead of an
    # N=1 MXU matmul.  Padded lanes of h and w2 are zero, so they drop out.
    c = jax.nn.sigmoid(jnp.sum(h * w2_ref[...], axis=-1, keepdims=True)
                       + b2_ref[...])                                        # (TB, 1)

    pp = p_zk * p_zb
    cpb = c * p_zb
    out_ref[0, :, :] = pp - cpb      # TIE_logits
    out_ref[1, :, :] = pp            # prob_zk * prob_zb
    out_ref[2, :, :] = cpb           # c * prob_zb


@jax.jit
def mv_forward(logit, logit_np, w1b, w2_row, b2):
    B, K = logit.shape

    # Batch tiling: whole batch in one tile when small; bounded multiple-of-8
    # tiles with a parallel grid when large.
    B_pad = _round_up(B, 8)
    if B_pad > MAX_BATCH_TILE:
        tb = MAX_BATCH_TILE
        B_pad = _round_up(B, tb)
    else:
        tb = B_pad
    if B_pad != B:
        pad = ((0, B_pad - B), (0, 0))
        logit = jnp.pad(logit, pad)
        logit_np = jnp.pad(logit_np, pad)

    stacked = jnp.stack([logit, logit_np], axis=0)          # (2, B_pad, K)

    out = pl.pallas_call(
        mv_kernel,
        out_shape=jax.ShapeDtypeStruct((3, B_pad, K), jnp.float32),
        grid_spec=pltpu.PrefetchScalarGridSpec(
            num_scalar_prefetch=0,
            grid=(B_pad // tb,),
            in_specs=[
                pl.BlockSpec((2, tb, K), lambda i: (0, i, 0)),
                pl.BlockSpec((W1_ROWS, H_PAD), lambda i: (0, 0)),   # resident
                pl.BlockSpec((1, H_PAD), lambda i: (0, 0)),         # resident
                pl.BlockSpec((1, 1), lambda i: (0, 0)),             # resident
            ],
            out_specs=pl.BlockSpec((3, tb, K), lambda i: (0, i, 0)),
        ),
        compiler_params=pltpu.CompilerParams(
            dimension_semantics=("parallel",)),
    )(stacked, w1b, w2_row, b2)

    return out[0, :B], out[1, :B], out[2, :B]


def init_params(key, num_options=NUM_OPTIONS, hidden=HIDDEN):
    """Deterministic PyTorch-Linear-style init (uniform +-1/sqrt(fan_in))."""
    in1 = num_options * 2 + 1
    k1, k2, k3, k4 = jax.random.split(key, 4)
    bound1 = 1.0 / jnp.sqrt(in1)
    bound2 = 1.0 / jnp.sqrt(hidden)
    w1 = jax.random.uniform(k1, (hidden, in1), jnp.float32, -bound1, bound1)   # (out, in)
    b1 = jax.random.uniform(k2, (hidden,), jnp.float32, -bound1, bound1)
    w2 = jax.random.uniform(k3, (1, hidden), jnp.float32, -bound2, bound2)
    b2 = jax.random.uniform(k4, (1,), jnp.float32, -bound2, bound2)
    return w1, b1, w2, b2


def pack_params(w1, b1, w2, b2, num_options=NUM_OPTIONS, hidden=HIDDEN):
    """Repack PyTorch-style (out, in) weights into the kernel's padded layout."""
    in1 = 2 * num_options + 1
    w1b = jnp.zeros((W1_ROWS, H_PAD), jnp.float32)
    w1b = w1b.at[:in1, :hidden].set(w1.T)        # rows 0:2K+1 <- W1^T
    w1b = w1b.at[in1, :hidden].set(b1)           # row  2K+1  <- b1 (constant-1 lane)
    w2_row = jnp.zeros((1, H_PAD), jnp.float32).at[0, :hidden].set(w2[0])
    b2_2d = jnp.asarray(b2, jnp.float32).reshape(1, 1)
    return w1b, w2_row, b2_2d


def reference_forward(logit, logit_np, w1, b1, w2, b2):
    """Pure-JAX reference mirroring the PyTorch module (for a sanity check)."""
    pzk = jax.nn.softmax(logit, axis=-1)
    pzb = jax.nn.softmax(logit_np, axis=-1)
    m = 0.5 * (pzk + pzb)
    js = 0.5 * (jnp.sum(pzk * jnp.log(pzk / m), -1) + jnp.sum(pzb * jnp.log(pzb / m), -1))
    x = jnp.concatenate([pzk, pzb, js[:, None]], axis=-1)
    h = jnp.tanh(x @ w1.T + b1)
    c = jax.nn.sigmoid(h @ w2.T + b2)
    return pzk * pzb - c * pzb, pzk * pzb, c * pzb


if __name__ == "__main__":
    key = jax.random.PRNGKey(0)
    k_logit, k_logit_np, k_params = jax.random.split(key, 3)

    B = 8
    logit = jax.random.normal(k_logit, (B, NUM_OPTIONS), jnp.float32)
    logit_np = jax.random.normal(k_logit_np, (B, NUM_OPTIONS), jnp.float32)

    w1, b1, w2, b2 = init_params(k_params)
    w1b, w2_row, b2_2d = pack_params(w1, b1, w2, b2)

    tie, pp, cpb = mv_forward(logit, logit_np, w1b, w2_row, b2_2d)
    jax.block_until_ready((tie, pp, cpb))

    ref_tie, ref_pp, ref_cpb = reference_forward(logit, logit_np, w1, b1, w2, b2)
    assert jnp.allclose(tie, ref_tie, atol=1e-5), "TIE_logits mismatch"
    assert jnp.allclose(pp, ref_pp, atol=1e-5), "prob_zk*prob_zb mismatch"
    assert jnp.allclose(cpb, ref_cpb, atol=1e-5), "c*prob_zb mismatch"

    print("KERNEL_OK")
</pallas_src>

<mosaic_0001>
module attributes {stable_mosaic.version = 11 : i64} {
  func.func @mv_kernel(%arg0: i32, %arg1: memref<2x8x4xf32, #tpu.memory_space<vmem>>, %arg2: memref<16x128xf32, #tpu.memory_space<vmem>>, %arg3: memref<1x128xf32, #tpu.memory_space<vmem>>, %arg4: memref<1x1xf32, #tpu.memory_space<vmem>>, %arg5: memref<3x8x4xf32, #tpu.memory_space<vmem>>) attributes {dimension_semantics = [#tpu.dimension_semantics<parallel>], iteration_bounds = array<i64: 1>, scalar_prefetch = 0 : i64, scratch_operands = 0 : i64, tpu.core_type = #tpu.core_type<tc>, window_params = [{transform_indices = @transform_0, window_bounds = array<i64: 2, 8, 4>}, {pipeline_mode = #tpu.pipeline_mode<synchronous>, transform_indices = @transform_1, window_bounds = array<i64: 16, 128>}, {pipeline_mode = #tpu.pipeline_mode<synchronous>, transform_indices = @transform_2, window_bounds = array<i64: 1, 128>}, {pipeline_mode = #tpu.pipeline_mode<synchronous>, transform_indices = @transform_3, window_bounds = array<i64: 1, 1>}, {transform_indices = @transform_4, window_bounds = array<i64: 3, 8, 4>}]} {
    %c0 = arith.constant 0 : index
    %c0_0 = arith.constant 0 : index
    %c0_1 = arith.constant 0 : index
    %0 = vector.load %arg1[%c0, %c0_0, %c0_1] : memref<2x8x4xf32, #tpu.memory_space<vmem>>, vector<1x8x4xf32>
    %1 = vector.shape_cast %0 : vector<1x8x4xf32> to vector<8x4xf32>
    %cst = arith.constant dense<0xFF800000> : vector<8xf32>
    %2 = vector.multi_reduction <maximumf>, %1, %cst [1] : vector<8x4xf32> to vector<8xf32>
    %3 = vector.shape_cast %2 : vector<8xf32> to vector<8x1xf32>
    %4 = vector.broadcast %3 : vector<8x1xf32> to vector<8x4xf32>
    %5 = arith.subf %1, %4 : vector<8x4xf32>
    %6 = math.exp %5 : vector<8x4xf32>
    %cst_2 = arith.constant dense<0.000000e+00> : vector<8xf32>
    %7 = vector.multi_reduction <add>, %6, %cst_2 [1] : vector<8x4xf32> to vector<8xf32>
    %8 = vector.shape_cast %7 : vector<8xf32> to vector<8x1xf32>
    %9 = vector.broadcast %8 : vector<8x1xf32> to vector<8x4xf32>
    %10 = arith.divf %6, %9 : vector<8x4xf32>
    %11 = math.log %8 : vector<8x1xf32>
    %12 = vector.broadcast %11 : vector<8x1xf32> to vector<8x4xf32>
    %13 = arith.subf %5, %12 : vector<8x4xf32>
    %c1 = arith.constant 1 : index
    %c0_3 = arith.constant 0 : index
    %c0_4 = arith.constant 0 : index
    %14 = vector.load %arg1[%c1, %c0_3, %c0_4] : memref<2x8x4xf32, #tpu.memory_space<vmem>>, vector<1x8x4xf32>
    %15 = vector.shape_cast %14 : vector<1x8x4xf32> to vector<8x4xf32>
    %cst_5 = arith.constant dense<0xFF800000> : vector<8xf32>
    %16 = vector.multi_reduction <maximumf>, %15, %cst_5 [1] : vector<8x4xf32> to vector<8xf32>
    %17 = vector.shape_cast %16 : vector<8xf32> to vector<8x1xf32>
    %18 = vector.broadcast %17 : vector<8x1xf32> to vector<8x4xf32>
    %19 = arith.subf %15, %18 : vector<8x4xf32>
    %20 = math.exp %19 : vector<8x4xf32>
    %cst_6 = arith.constant dense<0.000000e+00> : vector<8xf32>
    %21 = vector.multi_reduction <add>, %20, %cst_6 [1] : vector<8x4xf32> to vector<8xf32>
    %22 = vector.shape_cast %21 : vector<8xf32> to vector<8x1xf32>
    %23 = vector.broadcast %22 : vector<8x1xf32> to vector<8x4xf32>
    %24 = arith.divf %20, %23 : vector<8x4xf32>
    %25 = math.log %22 : vector<8x1xf32>
    %26 = vector.broadcast %25 : vector<8x1xf32> to vector<8x4xf32>
    %27 = arith.subf %19, %26 : vector<8x4xf32>
    %28 = arith.addf %10, %24 : vector<8x4xf32>
    %cst_7 = arith.constant 5.000000e-01 : f32
    %29 = vector.broadcast %cst_7 : f32 to vector<8x4xf32>
    %30 = arith.mulf %29, %28 : vector<8x4xf32>
    %31 = math.log %30 : vector<8x4xf32>
    %32 = arith.subf %13, %31 : vector<8x4xf32>
    %33 = arith.mulf %10, %32 : vector<8x4xf32>
    %cst_8 = arith.constant dense<0.000000e+00> : vector<8xf32>
    %34 = vector.multi_reduction <add>, %33, %cst_8 [1] : vector<8x4xf32> to vector<8xf32>
    %35 = vector.shape_cast %34 : vector<8xf32> to vector<8x1xf32>
    %36 = arith.subf %27, %31 : vector<8x4xf32>
    %37 = arith.mulf %24, %36 : vector<8x4xf32>
    %cst_9 = arith.constant dense<0.000000e+00> : vector<8xf32>
    %38 = vector.multi_reduction <add>, %37, %cst_9 [1] : vector<8x4xf32> to vector<8xf32>
    %39 = vector.shape_cast %38 : vector<8xf32> to vector<8x1xf32>
    %40 = arith.addf %35, %39 : vector<8x1xf32>
    %cst_10 = arith.constant 5.000000e-01 : f32
    %41 = vector.broadcast %cst_10 : f32 to vector<8x1xf32>
    %42 = arith.mulf %41, %40 : vector<8x1xf32>
    %cst_11 = arith.constant 1.000000e+00 : f32
    %43 = vector.broadcast %cst_11 : f32 to vector<8x1xf32>
    %cst_12 = arith.constant 0.000000e+00 : f32
    %44 = vector.broadcast %cst_12 : f32 to vector<8x6xf32>
    %45 = tpu.concatenate %10, %24, %42, %43, %44 in 1 : vector<8x4xf32>, vector<8x4xf32>, vector<8x1xf32>, vector<8x1xf32>, vector<8x6xf32> -> vector<8x16xf32>
    %c0_13 = arith.constant 0 : index
    %c0_14 = arith.constant 0 : index
    %46 = vector.load %arg2[%c0_13, %c0_14] : memref<16x128xf32, #tpu.memory_space<vmem>>, vector<16x128xf32>
    %cst_15 = arith.constant dense<0.000000e+00> : vector<8x128xf32>
    %47 = tpu.matmul %45, %46, %cst_15 {dimension_numbers = #tpu.dot_dimension_numbers<[1], [0], [0], [1], [0, 0, 1, 1], [], []>} : vector<8x16xf32>, vector<16x128xf32>, vector<8x128xf32> -> vector<8x128xf32>
    %48 = math.tanh %47 : vector<8x128xf32>
    %c0_16 = arith.constant 0 : index
    %c0_17 = arith.constant 0 : index
    %49 = vector.load %arg3[%c0_16, %c0_17] : memref<1x128xf32, #tpu.memory_space<vmem>>, vector<1x128xf32>
    %50 = vector.broadcast %49 : vector<1x128xf32> to vector<8x128xf32>
    %51 = arith.mulf %48, %50 : vector<8x128xf32>
    %cst_18 = arith.constant dense<0.000000e+00> : vector<8xf32>
    %52 = vector.multi_reduction <add>, %51, %cst_18 [1] : vector<8x128xf32> to vector<8xf32>
    %53 = vector.shape_cast %52 : vector<8xf32> to vector<8x1xf32>
    %c0_19 = arith.constant 0 : index
    %c0_20 = arith.constant 0 : index
    %54 = vector.load %arg4[%c0_19, %c0_20] : memref<1x1xf32, #tpu.memory_space<vmem>>, vector<1x1xf32>
    %55 = vector.broadcast %54 : vector<1x1xf32> to vector<8x1xf32>
    %56 = arith.addf %53, %55 : vector<8x1xf32>
    %57 = arith.negf %56 : vector<8x1xf32>
    %58 = math.exp %57 : vector<8x1xf32>
    %cst_21 = arith.constant 1.000000e+00 : f32
    %59 = vector.broadcast %cst_21 : f32 to vector<8x1xf32>
    %60 = arith.addf %59, %58 : vector<8x1xf32>
    %61 = arith.divf %59, %60 : vector<8x1xf32>
    %62 = arith.mulf %10, %24 : vector<8x4xf32>
    %63 = vector.broadcast %61 : vector<8x1xf32> to vector<8x4xf32>
    %64 = arith.mulf %63, %24 : vector<8x4xf32>
    %65 = arith.subf %62, %64 : vector<8x4xf32>
    %c0_22 = arith.constant 0 : index
    %c0_23 = arith.constant 0 : index
    %c0_24 = arith.constant 0 : index
    %66 = vector.load %arg5[%c0_22, %c0_23, %c0_24] : memref<3x8x4xf32, #tpu.memory_space<vmem>>, vector<1x8x4xf32>
    %67 = vector.shape_cast %66 : vector<1x8x4xf32> to vector<8x4xf32>
    %68 = vector.shape_cast %65 : vector<8x4xf32> to vector<1x8x4xf32>
    tpu.vector_store %arg5[%c0_22, %c0_23, %c0_24], %68 {strides = array<i32>} : memref<3x8x4xf32, #tpu.memory_space<vmem>>, vector<1x8x4xf32>,
    %c1_25 = arith.constant 1 : index
    %c0_26 = arith.constant 0 : index
    %c0_27 = arith.constant 0 : index
    %69 = vector.load %arg5[%c1_25, %c0_26, %c0_27] : memref<3x8x4xf32, #tpu.memory_space<vmem>>, vector<1x8x4xf32>
    %70 = vector.shape_cast %69 : vector<1x8x4xf32> to vector<8x4xf32>
    %71 = vector.shape_cast %62 : vector<8x4xf32> to vector<1x8x4xf32>
    tpu.vector_store %arg5[%c1_25, %c0_26, %c0_27], %71 {strides = array<i32>} : memref<3x8x4xf32, #tpu.memory_space<vmem>>, vector<1x8x4xf32>,
    %c2 = arith.constant 2 : index
    %c0_28 = arith.constant 0 : index
    %c0_29 = arith.constant 0 : index
    %72 = vector.load %arg5[%c2, %c0_28, %c0_29] : memref<3x8x4xf32, #tpu.memory_space<vmem>>, vector<1x8x4xf32>
    %73 = vector.shape_cast %72 : vector<1x8x4xf32> to vector<8x4xf32>
    %74 = vector.shape_cast %64 : vector<8x4xf32> to vector<1x8x4xf32>
    tpu.vector_store %arg5[%c2, %c0_28, %c0_29], %74 {strides = array<i32>} : memref<3x8x4xf32, #tpu.memory_space<vmem>>, vector<1x8x4xf32>,
    return
  }
  func.func @transform_0(%arg0: i32) -> (i32, i32, i32) {
    %c0_i32 = arith.constant 0 : i32
    %c0_i32_0 = arith.constant 0 : i32
    %c0_i32_1 = arith.constant 0 : i32
    return %c0_i32, %arg0, %c0_i32_0 : i32, i32, i32
  }
  func.func @transform_1(%arg0: i32) -> (i32, i32) {
    %c0_i32 = arith.constant 0 : i32
    %c0_i32_0 = arith.constant 0 : i32
    %c0_i32_1 = arith.constant 0 : i32
    return %c0_i32, %c0_i32_0 : i32, i32
  }
  func.func @transform_2(%arg0: i32) -> (i32, i32) {
    %c0_i32 = arith.constant 0 : i32
    %c0_i32_0 = arith.constant 0 : i32
    %c0_i32_1 = arith.constant 0 : i32
    return %c0_i32, %c0_i32_0 : i32, i32
  }
  func.func @transform_3(%arg0: i32) -> (i32, i32) {
    %c0_i32 = arith.constant 0 : i32
    %c0_i32_0 = arith.constant 0 : i32
    %c0_i32_1 = arith.constant 0 : i32
    return %c0_i32, %c0_i32_0 : i32, i32
  }
  func.func @transform_4(%arg0: i32) -> (i32, i32, i32) {
    %c0_i32 = arith.constant 0 : i32
    %c0_i32_0 = arith.constant 0 : i32
    %c0_i32_1 = arith.constant 0 : i32
    return %c0_i32, %arg0, %c0_i32_0 : i32, i32, i32
  }
}

</mosaic_0001>

<bundles_post_ra>
// kernel: mv_forward.1
= control target key start
LH: loop header
LB: loop body
LE: loop exit
PB: predicated region body
PF: predicated region fallthrough
CT: control target
= control target key end

     0   :  { %vm20_vm0 = vcmask 31744   ;;  %v243_v40 = vmov 0.0|0.0   ;;  %vm244_vm1 = vmmov 0   ;;  %v245_v41 = vmov 0.0   ;;  %s246_s24 = smov 4   ;;  %s321_s0 = inlined_call_operand.vmem [shape: f32[2,8,4], index: 0, kind: input, shape index: {}]   ;;  %s322_s4 = inlined_call_operand.vmem [shape: f32[3,8,4], index: 4, kind: output, shape index: {}]   ;;  %s323_s1 = inlined_call_operand.vmem [shape: f32[16,128], index: 1, kind: input, shape index: {}]   ;;  %s324_s3 = inlined_call_operand.<no memory space> [shape: f32[1,1], index: 3, kind: input, shape index: {}]   ;;  %s325_s2 = inlined_call_operand.vmem [shape: f32[1,128], index: 2, kind: input, shape index: {}]  }
   0x1   :  { %v19_v0 = vld [vmem:[%s321_s0] sm:$0xff]  ;;  %v196_v1 = vld [vmem:[%s321_s0 + $0x8] sm:$0xff]  ;;  %213 = vmatprep.subr.bf16.mxu0 %v243_v40  ;;  %210 = vmatprep.mubr.msk.f32.mxu0 %vm244_vm1, %v245_v41  ;;  %vm72_vm2 = vcmask 64512   ;;  %vm74_vm3 = vcmask 72704   ;;  %vm76_vm4 = vcmask 80896   ;;  %vm80_vm5 = vcmask 130048  }
   0x2   :  { %v21_v2 = vsel %vm20_vm0, %v19_v0, -inf  ;;  %v37_v3 = vsel %vm20_vm0, %v196_v1, -inf  ;;  %v78_v37 = vld [vmem:[%s323_s1] sm:$0xff]  ;;  %v79_v38 = vld [vmem:[%s323_s1 + $0x8] sm:$0xff]  ;;  %v9_v51 = vstv %s324_s3  ;;  %v247_v57 = vmov 0  }
   0x3   :  { %22 = vmax.xlane.f32.xlu0 %v21_v2  ;;  %v214_v39 = vpack.c.bf16 %v79_v38, %v78_v37  ;;  %10 = vst [vmem:[#allocation2] sm:$0x1] %v9_v51  ;;  %v198_v54 = vld [vmem:[%s325_s2] ss:$0 sm:$0xff]  ;;  %221 = vset.pattern.permute.xlu1 %v247_v57 }
   0x4   :  { %222 = vset.pattern.permute.xlu0 %v247_v57 }
   0x5   :  { %215 = vmatpush3.bf16.msra.mxu0 %v214_v39 }
   0x7   :  { %38 = vmax.xlane.f32.xlu0 %v37_v3 }
   0xa   :  { %v199_v58 = vld [vmem:[#allocation2] ss:$0 sm:$0xff] }
  0x90   :  { %v23_v4 = vpop.xlane.xlu0 %22 }
  0x91   :  { %v24_v5 = vsub.f32 %v19_v0, %v23_v4 }
  0x93   :  { %v25_v6 = vmul.f32 1.442695, %v24_v5 }
  0x94   :  { %v39_v7 = vpop.xlane.xlu0 %38 }
  0x95   :  { %223 = vpow2.f32 %v25_v6  ;;  %v40_v8 = vsub.f32 %v196_v1, %v39_v7 }
  0x97   :  { %v41_v9 = vmul.f32 1.442695, %v40_v8 }
  0x99   :  { %225 = vpow2.f32 %v41_v9 }
  0x9f   :  { %v224_v10 = vpop.eup %223 }
  0xa0   :  { %v27_v11 = vsel %vm20_vm0, %v224_v10, 0.0 }
  0xa1   :  { %28 = vadd.xlane.f32.xlu1 %v27_v11 }
  0xa3   :  { %v226_v12 = vpop.eup %225 }
  0xa4   :  { %v43_v13 = vsel %vm20_vm0, %v226_v12, 0.0 }
  0xa5   :  { %44 = vadd.xlane.f32.xlu1 %v43_v13 }
 0x12e   :  { %v29_v14 = vpop.xlane.xlu1 %28 }
 0x12f   :  { %227 = vrcp.f32 %v29_v14 }
 0x132   :  { %v45_v15 = vpop.xlane.xlu1 %44 }
 0x133   :  { %229 = vrcp.f32 %v45_v15 }
 0x134   :  { %231 = vlog2.f32 %v29_v14 }
 0x135   :  { %233 = vlog2.f32 %v45_v15 }
 0x139   :  { %v228_v16 = vpop.eup %227 }
 0x13a   :  { %v31_v18 = vmul.f32 %v228_v16, %v224_v10 }
 0x13d   :  { %v230_v17 = vpop.eup %229 }
 0x13e   :  { %v283_v19 = vmul.f32 %v230_v17, %v226_v12  ;;  %v232_v23 = vpop.eup %231 }
 0x13f   :  { %v234_v24 = vpop.eup %233  ;;  %v33_v25 = vmul.f32 0.6931472, %v232_v23 }
 0x140   :  { %v51_v20 = vadd.f32 %v283_v19, %v31_v18  ;;  %v287_v21 = vmul.f32 %v283_v19, %v31_v18  ;;  %v49_v26 = vmul.f32 0.6931472, %v234_v24 }
 0x141   :  { %v34_v30 = vsub.f32 %v24_v5, %v33_v25 }
 0x142   :  { %v52_v22 = vmul.f32 0.5, %v51_v20  ;;  %201 = vst.msk [vmem:[%s322_s4 + $0x8] sm:$0xff] %vm20_vm0, %v287_v21  ;;  %v50_v28 = vsub.f32 %v40_v8, %v49_v26 }
 0x144   :  { %235 = vlog2.f32 %v52_v22 }
 0x14e   :  { %v236_v27 = vpop.eup %235 }
 0x14f   :  { %v54_v29 = vmul.f32 0.6931472, %v236_v27 }
 0x151   :  { %v60_v31 = vsub.f32 %v50_v28, %v54_v29  ;;  %v55_v32 = vsub.f32 %v34_v30, %v54_v29 }
 0x153   :  { %v61_v33 = vmul.f32 %v60_v31, %v283_v19  ;;  %v56_v34 = vmul.f32 %v55_v32, %v31_v18 }
 0x155   :  { %v62_v35 = vsel %vm20_vm0, %v61_v33, 0.0  ;;  %v57_v36 = vsel %vm20_vm0, %v56_v34, 0.0 }
 0x156   :  { %63 = vadd.xlane.f32.xlu1 %v62_v35  ;;  %58 = vadd.xlane.f32.xlu0 %v57_v36 }
 0x16c   :  { %68 = vrot.lane.b32.xlu0 %v283_v19, %s246_s24 }
 0x1e3   :  { %v64_v42 = vpop.xlane.xlu1 %63  ;;  %v59_v43 = vpop.xlane.xlu0 %58 }
 0x1e4   :  { %v65_v44 = vadd.f32 %v64_v42, %v59_v43 }
 0x1e6   :  { %v66_v45 = vmul.f32 0.5, %v65_v44 }
 0x1e7   :  { %v69_v46 = vpop.permute.xlu0 %68 }
 0x1e8   :  { %v71_v47 = vsel %vm20_vm0, %v31_v18, %v69_v46 }
 0x1e9   :  { %v73_v48 = vsel %vm72_vm2, %v71_v47, %v66_v45 }
 0x1ea   :  { %v75_v49 = vsel %vm74_vm3, %v73_v48, 1.0 }
 0x1eb   :  { %v77_v50 = vsel %vm76_vm4, %v75_v49, 0.0 }
 0x1ec   :  { %211 = vmatmul.mubr.msk.f32.vlgmr.msra.gmra.mrb[0].mxu0 %vm80_vm5, %v77_v50 }
 0x2bf   :  { %v150_v52 = vpop.f32.mrb[0].mxu0 }
 0x2c0   :  { %237 = vtanh.f32 %v150_v52  ;;  %v212_v53 = vpop.f32.mrb[1].mxu0 }
 0x2ca   :  { %v238_v55 = vpop.eup %237 }
 0x2cb   :  { %v162_v56 = vmul.f32 %v238_v55, %v198_v54 }
 0x2cd   :  { %163 = vadd.xlane.f32.xlu1 %v162_v56 }
 0x35a   :  { %v164_v59 = vpop.xlane.xlu1 %163 }
 0x35b   :  { %v172_v60 = vadd.f32 %v199_v58, %v164_v59 }
 0x35d   :  { %v200_v61 = vmul.f32 -1.442695, %v172_v60 }
 0x35f   :  { %239 = vpow2.f32 %v200_v61 }
 0x369   :  { %v240_v62 = vpop.eup %239 }
 0x36a   :  { %v176_v63 = vadd.f32 1.0, %v240_v62 }
 0x36c   :  { %241 = vrcp.f32 %v176_v63 }
 0x376   :  { %v242_v0 = vpop.eup %241 }
 0x377   :  { %182 = vperm.xlu1 %221, %v242_v0  }
 0x3f6   :  { %v183_v1 = vpop.permute.xlu1 %182 }
 0x3f7   :  { %v185_v2 = vmul.f32 %v183_v1, %v283_v19 }
 0x3f9   :  { %v186_v3 = vsub.f32 %v287_v21, %v185_v2  ;;  %202 = vst.msk [vmem:[%s322_s4 + $0x10] sm:$0xff] %vm20_vm0, %v185_v2 }
 0x3fb   :  { %187 = vst.msk [vmem:[%s322_s4] sm:$0xff] %vm20_vm0, %v186_v3 }

</bundles_post_ra>
